<compile_context>
chip_gen: v7x
topology: tpu7x:2x2x1
jax: 0.10.0
libtpu: 0.0.40
codegen_flags: <defaults>
</compile_context>

<pallas_src>
import jax
import jax.numpy as jnp
from jax import lax
from jax.experimental import pallas as pl
from jax.experimental.pallas import tpu as pltpu

IN_FC = 512
OUT_FC = 6
OUT_ROWS = 8          # output features padded 6 -> 8 (one full sublane group)
EPS = 1e-5

# Gridless (single-tile) row ceiling: per row the live set is ~2 KiB of f32
# activations (+ the bf16 source copy if the input is bf16) + 32 B of output,
# so 8192 rows stays well under v7x's 64 MiB physical VMEM with margin for
# compiler temporaries.  Larger N needs a row-tiled two-phase kernel.
GRIDLESS_ROW_LIMIT = 8192


def au_linear_kernel(x_ref, gamma_ref, beta_ref, w_ref, out_ref):
    x = x_ref[...].astype(jnp.float32)                   # (N, 512) f32
    inv_n = jnp.float32(1.0 / x.shape[0])

    # Single-pass batch statistics per feature (lane); biased variance matches
    # nn.BatchNorm1d's training-mode normalization.  Clamp guards against
    # negative variance from cancellation (would NaN under rsqrt).
    s = jnp.sum(x, axis=0, keepdims=True)                # (1, 512)
    ss = jnp.sum(x * x, axis=0, keepdims=True)           # (1, 512)
    mu = s * inv_n
    var = jnp.maximum(ss * inv_n - mu * mu, 0.0)
    inv_std = lax.rsqrt(var + EPS)                       # EUP rsqrt

    # Fold BN into the (tiny, N-independent) weight instead of touching x:
    #   out[i, j] = sum_k (x[i,k]*scale[k] + shift[k]) * w[j,k]
    #             = sum_k x[i,k] * w_scaled[j,k]  +  bias[j]
    scale = gamma_ref[...] * inv_std                     # (1, 512)
    shift = beta_ref[...] - mu * scale                   # (1, 512)
    w = w_ref[...]                                       # (8, 512) f32
    w_scaled = w * scale                                 # (8, 512)
    bias = jnp.sum(w * shift, axis=1, keepdims=True)     # (8, 1)

    # "NT" matmul: contract the 512 axis of both operands -> (8, N) result,
    # lane-dense along N, f32 accumulation on the MXU.
    out_t = lax.dot_general(
        w_scaled, x, (((1,), (1,)), ((), ())),
        preferred_element_type=jnp.float32)              # (8, N)
    out_ref[...] = out_t + bias


def prepare_weight(w):
    """(6, 512) PyTorch nn.Linear weight -> (8, 512) f32, zero-padded rows.

    Call once per weight (outside the per-step jit) so the padding is not
    re-built and re-launched on every forward call."""
    w = jnp.asarray(w, jnp.float32)
    return jnp.zeros((OUT_ROWS, IN_FC), jnp.float32).at[:OUT_FC, :].set(w)


def au_linear_forward(x, gamma, beta, w_pad):
    """x: any shape with numel % 512 == 0 (PyTorch `view(-1, 512)`); f32 or
    bf16 (bf16 is read as-is and upcast inside the kernel).
    gamma, beta: (512,) BatchNorm1d affine params.
    w_pad: (8, 512) f32 weight from prepare_weight()."""
    xf = x.reshape(-1, IN_FC)                            # .view(-1, 512)
    n = xf.shape[0]

    if n > GRIDLESS_ROW_LIMIT:
        # TODO(synk): row-tiled two-phase path for large N (phase 0: accumulate
        # per-feature sum/sumsq over row tiles; phase 1: matmul per tile with
        # a "parallel" row axis for v7x's two TensorCores).
        raise NotImplementedError(
            f"Au_Linear gridless kernel supports at most {GRIDLESS_ROW_LIMIT} "
            f"rows; got {n}. A row-tiled two-phase kernel is required.")

    # VMEM footprint: input copy (+ f32 upcast if bf16), transposed output,
    # params, plus margin for compiler temporaries.
    x_in_bytes = n * IN_FC * xf.dtype.itemsize
    x_f32_bytes = n * IN_FC * 4
    out_bytes = OUT_ROWS * n * 4
    param_bytes = (2 + OUT_ROWS) * IN_FC * 4
    vmem_limit = int(min(x_in_bytes + x_f32_bytes + out_bytes + param_bytes
                         + (4 << 20), 56 << 20))

    out_t = pl.pallas_call(
        au_linear_kernel,
        out_shape=jax.ShapeDtypeStruct((OUT_ROWS, n), jnp.float32),
        in_specs=[
            pl.BlockSpec(memory_space=pltpu.MemorySpace.VMEM),  # x
            pl.BlockSpec(memory_space=pltpu.MemorySpace.VMEM),  # gamma
            pl.BlockSpec(memory_space=pltpu.MemorySpace.VMEM),  # beta
            pl.BlockSpec(memory_space=pltpu.MemorySpace.VMEM),  # padded weight
        ],
        out_specs=pl.BlockSpec(memory_space=pltpu.MemorySpace.VMEM),
        compiler_params=pltpu.CompilerParams(vmem_limit_bytes=vmem_limit),
    )(xf,
      gamma.reshape(1, IN_FC).astype(jnp.float32),
      beta.reshape(1, IN_FC).astype(jnp.float32),
      w_pad)

    # Tiny (8, N) -> (N, 6) in the wrapper (32 B/row instead of 512 B/row).
    return out_t[:OUT_FC, :].T


def au_linear_reference(x, gamma, beta, w):
    """Pure-JAX reference in full f32 (PyTorch-parity two-pass statistics)."""
    xf = x.reshape(-1, IN_FC).astype(jnp.float32)
    mu = jnp.mean(xf, axis=0, keepdims=True)
    var = jnp.mean((xf - mu) ** 2, axis=0, keepdims=True)        # biased var
    xn = (xf - mu) * lax.rsqrt(var + EPS) * gamma + beta
    return jnp.dot(xn, w.T.astype(jnp.float32),
                   precision=lax.Precision.HIGHEST)


if __name__ == "__main__":
    key = jax.random.PRNGKey(0)
    kx, kg, kb, kw = jax.random.split(key, 4)

    # PyTorch-style input that .view(-1, 512)s to 16 rows: (batch=2, seq=8, 512)
    x = jax.random.normal(kx, (2, 8, IN_FC), jnp.float32)
    gamma = 1.0 + 0.1 * jax.random.normal(kg, (IN_FC,), jnp.float32)
    beta = 0.1 * jax.random.normal(kb, (IN_FC,), jnp.float32)
    w = (IN_FC ** -0.5) * jax.random.normal(kw, (OUT_FC, IN_FC), jnp.float32)

    w_pad = prepare_weight(w)                 # once per weight, outside the jit
    fwd = jax.jit(au_linear_forward)

    out = jax.block_until_ready(fwd(x, gamma, beta, w_pad))
    assert out.shape == (2 * 8, OUT_FC), out.shape

    ref = au_linear_reference(x, gamma, beta, w)
    assert jnp.allclose(out, ref, rtol=2e-2, atol=2e-2), (out, ref)

    print("KERNEL_OK")
</pallas_src>

<mosaic_0001>
module attributes {stable_mosaic.version = 11 : i64} {
  func.func @au_linear_kernel(%arg0: memref<16x512xf32, #tpu.memory_space<vmem>>, %arg1: memref<1x512xf32, #tpu.memory_space<vmem>>, %arg2: memref<1x512xf32, #tpu.memory_space<vmem>>, %arg3: memref<8x512xf32, #tpu.memory_space<vmem>>, %arg4: memref<8x16xf32, #tpu.memory_space<vmem>>) attributes {dimension_semantics = [], scalar_prefetch = 0 : i64, scratch_operands = 0 : i64, tpu.core_type = #tpu.core_type<tc>} {
    %c0 = arith.constant 0 : index
    %c0_0 = arith.constant 0 : index
    %0 = vector.load %arg0[%c0, %c0_0] : memref<16x512xf32, #tpu.memory_space<vmem>>, vector<16x512xf32>
    %cst = arith.constant dense<0.000000e+00> : vector<512xf32>
    %1 = vector.multi_reduction <add>, %0, %cst [0] : vector<16x512xf32> to vector<512xf32>
    %2 = vector.shape_cast %1 : vector<512xf32> to vector<1x512xf32>
    %3 = arith.mulf %0, %0 : vector<16x512xf32>
    %cst_1 = arith.constant dense<0.000000e+00> : vector<512xf32>
    %4 = vector.multi_reduction <add>, %3, %cst_1 [0] : vector<16x512xf32> to vector<512xf32>
    %5 = vector.shape_cast %4 : vector<512xf32> to vector<1x512xf32>
    %cst_2 = arith.constant 6.250000e-02 : f32
    %6 = vector.broadcast %cst_2 : f32 to vector<1x512xf32>
    %7 = arith.mulf %2, %6 : vector<1x512xf32>
    %cst_3 = arith.constant 6.250000e-02 : f32
    %8 = vector.broadcast %cst_3 : f32 to vector<1x512xf32>
    %9 = arith.mulf %5, %8 : vector<1x512xf32>
    %10 = arith.mulf %7, %7 : vector<1x512xf32>
    %11 = arith.subf %9, %10 : vector<1x512xf32>
    %cst_4 = arith.constant 0.000000e+00 : f32
    %12 = vector.broadcast %cst_4 : f32 to vector<1x512xf32>
    %13 = arith.maximumf %11, %12 : vector<1x512xf32>
    %cst_5 = arith.constant 9.99999974E-6 : f32
    %14 = vector.broadcast %cst_5 : f32 to vector<1x512xf32>
    %15 = arith.addf %13, %14 : vector<1x512xf32>
    %16 = math.rsqrt %15 : vector<1x512xf32>
    %c0_6 = arith.constant 0 : index
    %c0_7 = arith.constant 0 : index
    %17 = vector.load %arg1[%c0_6, %c0_7] : memref<1x512xf32, #tpu.memory_space<vmem>>, vector<1x512xf32>
    %18 = arith.mulf %17, %16 : vector<1x512xf32>
    %c0_8 = arith.constant 0 : index
    %c0_9 = arith.constant 0 : index
    %19 = vector.load %arg2[%c0_8, %c0_9] : memref<1x512xf32, #tpu.memory_space<vmem>>, vector<1x512xf32>
    %20 = arith.mulf %7, %18 : vector<1x512xf32>
    %21 = arith.subf %19, %20 : vector<1x512xf32>
    %c0_10 = arith.constant 0 : index
    %c0_11 = arith.constant 0 : index
    %22 = vector.load %arg3[%c0_10, %c0_11] : memref<8x512xf32, #tpu.memory_space<vmem>>, vector<8x512xf32>
    %23 = vector.broadcast %18 : vector<1x512xf32> to vector<8x512xf32>
    %24 = arith.mulf %22, %23 : vector<8x512xf32>
    %25 = vector.broadcast %21 : vector<1x512xf32> to vector<8x512xf32>
    %26 = arith.mulf %22, %25 : vector<8x512xf32>
    %cst_12 = arith.constant dense<0.000000e+00> : vector<8xf32>
    %27 = vector.multi_reduction <add>, %26, %cst_12 [1] : vector<8x512xf32> to vector<8xf32>
    %28 = vector.shape_cast %27 : vector<8xf32> to vector<8x1xf32>
    %cst_13 = arith.constant dense<0.000000e+00> : vector<8x16xf32>
    %29 = tpu.matmul %24, %0, %cst_13 {dimension_numbers = #tpu.dot_dimension_numbers<[1], [1], [0], [0], [0, 0, 1, 0], [], []>} : vector<8x512xf32>, vector<16x512xf32>, vector<8x16xf32> -> vector<8x16xf32>
    %30 = vector.broadcast %28 : vector<8x1xf32> to vector<8x16xf32>
    %31 = arith.addf %29, %30 : vector<8x16xf32>
    %c0_14 = arith.constant 0 : index
    %c0_15 = arith.constant 0 : index
    %32 = vector.load %arg4[%c0_14, %c0_15] : memref<8x16xf32, #tpu.memory_space<vmem>>, vector<8x16xf32>
    tpu.vector_store %arg4[%c0_14, %c0_15], %31 {strides = array<i32>} : memref<8x16xf32, #tpu.memory_space<vmem>>, vector<8x16xf32>,
    return
  }
}

</mosaic_0001>

<bundles_post_ra>
// kernel: au_linear_forward.1
= control target key start
LH: loop header
LB: loop body
LE: loop exit
PB: predicated region body
PF: predicated region fallthrough
CT: control target
= control target key end

     0   :  { %9 = vsyncpa [#allocation3], 0  ;;  %s560_s0 = inlined_call_operand.hbm [shape: f32[16,512], index: 0, kind: input, shape index: {}]   ;;  %s561_s1 = inlined_call_operand.vmem [shape: f32[1,512], index: 1, kind: input, shape index: {}]   ;;  %s562_s2 = inlined_call_operand.vmem [shape: f32[1,512], index: 2, kind: input, shape index: {}]   ;;  %s563_s3 = inlined_call_operand.hbm [shape: f32[8,512], index: 3, kind: input, shape index: {}]   ;;  %s564_s4 = inlined_call_operand.vmem [shape: f32[8,16], index: 4, kind: output, shape index: {}]  }
   0x1   :  { %10 = vsyncpa [#allocation5], 0  ;;  %s487_s15 = smov [#allocation2]   ;;  %s439_s19 = scalar_lea.hbm %s560_s0, 1024 }
   0x2   :  { %s16_s16 = sshll.u32 %s487_s15, 4  ;;  %p440_p0 = scmp.ne.s32.totalorder %s560_s0, %s439_s19  ;;  %s17_s16 = int_to_ptr.vmem [resolvable:$true] %s16_s16 }
   0x3   :  { %p443_p1 = scmp.lt.u32.totalorder %s439_s19, %s560_s0 }
   0x5   :  { %p445_p2 = pnand %p443_p1, %p440_p0 }
   0x7   :  { %448 = shalt.err (!%p445_p2)
}
   0x8   :  { %s449_s24 = scalar_lea.vmem %s17_s16, 1024  ;;  %p454_p4 = scmp.lt.s32.totalorder %s17_s16, %s17_s16 }
   0x9   :  { %p450_p3 = scmp.ne.s32.totalorder %s17_s16, %s449_s24  ;;  %p455_p5 = scmp.lt.s32.totalorder %s449_s24, %s449_s24 }
   0xb   :  { %p456_p6 = por %p455_p5, %p454_p4 }
   0xd   :  { %p457_p7 = pnand %p456_p6, %p450_p3 }
   0xf   :  { %460 = shalt.err (!%p457_p7)
}
  0x10   :  { %s488_s25 = smov 512   ;;  %s489_s26 = smov 32  }
  0x11   :  { %22 = dma.hbm_to_vmem [thread:$0]  %s560_s0, 1024, %s17_s16, [#allocation3], %s488_s25, %s488_s25, %s489_s26  }
  0x12   :  { %s490_s29 = smov [#allocation4]   ;;  %s461_s7 = scalar_lea.hbm %s563_s3, 512 }
  0x13   :  { %s33_s30 = sshll.u32 %s490_s29, 4  ;;  %p462_p8 = scmp.ne.s32.totalorder %s563_s3, %s461_s7  ;;  %s34_s30 = int_to_ptr.vmem [resolvable:$true] %s33_s30 }
  0x14   :  { %p465_p9 = scmp.lt.u32.totalorder %s461_s7, %s563_s3 }
  0x16   :  { %p467_p10 = pnand %p465_p9, %p462_p8 }
  0x18   :  { %470 = shalt.err (!%p467_p10)
}
  0x19   :  { %s471_s12 = scalar_lea.vmem %s34_s30, 512  ;;  %p476_p12 = scmp.lt.s32.totalorder %s34_s30, %s34_s30 }
  0x1a   :  { %p472_p11 = scmp.ne.s32.totalorder %s34_s30, %s471_s12  ;;  %p477_p13 = scmp.lt.s32.totalorder %s471_s12, %s471_s12 }
  0x1c   :  { %p478_p0 = por %p477_p13, %p476_p12 }
  0x1e   :  { %p479_p1 = pnand %p478_p0, %p472_p11 }
  0x20   :  { %482 = shalt.err (!%p479_p1)
}
  0x21   :  { %36 = dma.hbm_to_vmem [thread:$0]  %s563_s3, 512, %s34_s30, [#allocation5]  }
  0x22   :  { %483 = dma.done.wait [#allocation3], 1024  }
  0x23   :  { %484 = vsyncadd [#allocation3], 4294966272 }
  0x24   :  { %485 = dma.done.wait [#allocation5], 512  }
  0x25   :  { %486 = vsyncadd [#allocation5], 4294966784  ;;  %v44_v0 = vld [vmem:[#allocation2 + $0x8] sm:$0xff]  ;;  %v43_v2 = vld [vmem:[#allocation2] sm:$0xff]  ;;  %vm408_vm0 = vcmask 130048  }
  0x26   :  { %v48_v1 = vld [vmem:[#allocation2 + $0x28] sm:$0xff]  ;;  %v80_v4 = vmul.f32 %v44_v0, %v44_v0  ;;  %v47_v7 = vld [vmem:[#allocation2 + $0x20] sm:$0xff]  ;;  %v46_v8 = vld [vmem:[#allocation2 + $0x18] sm:$0xff]  ;;  %v79_v11 = vmul.f32 %v43_v2, %v43_v2 }
  0x27   :  { %v58_v3 = vadd.f32 %v48_v1, %v44_v0  ;;  %v84_v5 = vmul.f32 %v48_v1, %v48_v1  ;;  %v416_v6 = vpack.c.bf16 %v48_v1, %v44_v0  ;;  %v50_v9 = vld [vmem:[#allocation2 + $0x38] sm:$0xff]  ;;  %v51_v10 = vadd.f32 %v47_v7, %v43_v2  ;;  %v45_v14 = vld [vmem:[#allocation2 + $0x10] sm:$0xff] }
  0x28   :  { %v83_v12 = vmul.f32 %v47_v7, %v47_v7  ;;  %v418_v13 = vpack.c.bf16 %v47_v7, %v43_v2  ;;  %v49_v15 = vld [vmem:[#allocation2 + $0x30] sm:$0xff]  ;;  %v72_v18 = vadd.f32 %v50_v9, %v46_v8  ;;  %v82_v19 = vmul.f32 %v46_v8, %v46_v8 }
  0x29   :  { %v59_v16 = vrot.slane %v58_v3, 4  ;;  %v94_v17 = vadd.f32 %v84_v5, %v80_v4  ;;  %417 = vmatprep.subr.bf16.mxu1 %v416_v6  ;;  %v52_v20 = vrot.slane %v51_v10, 4  ;;  %v86_v22 = vmul.f32 %v50_v9, %v50_v9 }
  0x2a   :  { %v87_v21 = vadd.f32 %v83_v12, %v79_v11  ;;  %419 = vmatpush1.bf16.xpose.msra.mxu1 %v418_v13  ;;  %v420_v23 = vpack.c.bf16 %v50_v9, %v46_v8  ;;  %v73_v26 = vrot.slane %v72_v18, 4  ;;  %v65_v27 = vadd.f32 %v49_v15, %v45_v14 }
  0x2b   :  { %v60_v24 = vadd.f32 %v59_v16, %v58_v3  ;;  %v95_v25 = vrot.slane %v94_v17, 4  ;;  %v53_v28 = vadd.f32 %v52_v20, %v51_v10  ;;  %v108_v30 = vadd.f32 %v86_v22, %v82_v19 }
  0x2c   :  { %v88_v29 = vrot.slane %v87_v21, 4  ;;  %421 = vmatprep.subr.bf16.mxu0 %v420_v23  ;;  %v81_v31 = vmul.f32 %v45_v14, %v45_v14  ;;  %v74_v34 = vadd.f32 %v73_v26, %v72_v18  ;;  %v66_v35 = vrot.slane %v65_v27, 4 }
  0x2d   :  { %v61_v32 = vrot.slane %v60_v24, 2  ;;  %v96_v33 = vadd.f32 %v95_v25, %v94_v17  ;;  %v54_v36 = vrot.slane %v53_v28, 2  ;;  %v109_v38 = vrot.slane %v108_v30, 4 }
  0x2e   :  { %v89_v37 = vadd.f32 %v88_v29, %v87_v21  ;;  %v85_v39 = vmul.f32 %v49_v15, %v49_v15  ;;  %v75_v41 = vrot.slane %v74_v34, 2  ;;  %v67_v42 = vadd.f32 %v66_v35, %v65_v27 }
  0x2f   :  { %v97_v40 = vrot.slane %v96_v33, 2  ;;  %v422_v43 = vpack.c.bf16 %v49_v15, %v45_v14  ;;  %v55_v44 = vadd.f32 %v54_v36, %v53_v28  ;;  %v110_v46 = vadd.f32 %v109_v38, %v108_v30 }
  0x30   :  { %v90_v45 = vrot.slane %v89_v37, 2  ;;  %v101_v47 = vadd.f32 %v85_v39, %v81_v31  ;;  %v76_v49 = vadd.f32 %v75_v41, %v74_v34  ;;  %v68_v50 = vrot.slane %v67_v42, 2 }
  0x31   :  { %v98_v48 = vadd.f32 %v97_v40, %v96_v33  ;;  %423 = vmatpush1.bf16.xpose.msra.mxu0 %v422_v43  ;;  %v62_v51 = vadd.f32 %v61_v32, %v60_v24  ;;  %v56_v52 = vrot.slane %v55_v44, 1  ;;  %v111_v54 = vrot.slane %v110_v46, 2 }
  0x32   :  { %v91_v53 = vadd.f32 %v90_v45, %v89_v37  ;;  %v102_v55 = vrot.slane %v101_v47, 4  ;;  %v77_v57 = vrot.slane %v76_v49, 1  ;;  %v69_v58 = vadd.f32 %v68_v50, %v67_v42 }
  0x33   :  { %v99_v56 = vrot.slane %v98_v48, 1  ;;  %v63_v59 = vrot.slane %v62_v51, 1  ;;  %v112_v61 = vadd.f32 %v111_v54, %v110_v46  ;;  %v57_v63 = vadd.f32 %v56_v52, %v55_v44 }
  0x34   :  { %v92_v60 = vrot.slane %v91_v53, 1  ;;  %v103_v62 = vadd.f32 %v102_v55, %v101_v47  ;;  %v78_v0 = vadd.f32 %v77_v57, %v76_v49  ;;  %v70_v1 = vrot.slane %v69_v58, 1 }
  0x35   :  { %v64_v2 = vadd.f32 %v63_v59, %v62_v51  ;;  %v100_v3 = vadd.f32 %v99_v56, %v98_v48  ;;  %v113_v5 = vrot.slane %v112_v61, 1  ;;  %v541_v7 = vmul.f32 0.0625, %v57_v63  ;;  %v143_v51 = vld [vmem:[%s561_s1] sm:$0xf] }
  0x36   :  { %v93_v4 = vadd.f32 %v92_v60, %v91_v53  ;;  %v104_v6 = vrot.slane %v103_v62, 2  ;;  %v543_v8 = vmul.f32 0.0625, %v78_v0  ;;  %v71_v9 = vadd.f32 %v70_v1, %v69_v58  ;;  %v231_v58 = vld [vmem:[#allocation4 + $0x8] sm:$0xff]  ;;  %v230_v63 = vld [vmem:[#allocation4] sm:$0xff]  ;;  %v233_v0 = vld [vmem:[#allocation4 + $0x18] sm:$0xff] }
  0x37   :  { %v116_v10 = vmul.f32 0.0625, %v64_v2  ;;  %v120_v11 = vmul.f32 0.0625, %v100_v3  ;;  %v114_v13 = vadd.f32 %v113_v5, %v112_v61  ;;  %v123_v15 = vmul.f32 %v541_v7, %v541_v7  ;;  %v232_v1 = vld [vmem:[#allocation4 + $0x10] sm:$0xff] }
  0x38   :  { %v119_v12 = vmul.f32 0.0625, %v93_v4  ;;  %v105_v14 = vadd.f32 %v104_v6, %v103_v62  ;;  %v126_v16 = vmul.f32 %v543_v8, %v543_v8  ;;  %v117_v17 = vmul.f32 0.0625, %v71_v9 }
  0x39   :  { %v124_v18 = vmul.f32 %v116_v10, %v116_v10  ;;  %v122_v19 = vmul.f32 0.0625, %v114_v13  ;;  %v491_v36 = vmov 1966171168   ;;  %v153_v38 = vlaneseq }
  0x3a   :  { %v106_v20 = vrot.slane %v105_v14, 1  ;;  %v127_v21 = vsub.f32 %v119_v12, %v123_v15  ;;  %v125_v25 = vmul.f32 %v117_v17, %v117_v17  ;;  %v151_v37 = vunpack.c.l.s4 %v491_v36 }
  0x3b   :  { %v128_v22 = vsub.f32 %v120_v11, %v124_v18  ;;  %v130_v23 = vsub.f32 %v122_v19, %v126_v16  ;;  %v154_v40 = vshrl.u32 %v153_v38, 7 }
  0x3c   :  { %v107_v24 = vadd.f32 %v106_v20, %v105_v14  ;;  %v131_v26 = vmax.f32 %v127_v21, 0.0  ;;  %v152_v39 = vunpack.c.0.s8 %v151_v37 }
  0x3d   :  { %v132_v27 = vmax.f32 %v128_v22, 0.0  ;;  %v134_v28 = vmax.f32 %v130_v23, 0.0  ;;  %v178_v52 = vsub.s32 0, %v154_v40  ;;  %v182_v54 = vsub.s32 1, %v154_v40 }
  0x3e   :  { %v121_v29 = vmul.f32 0.0625, %v107_v24  ;;  %v135_v30 = vadd.f32 1e-05, %v131_v26  ;;  %v155_v44 = vsub.s32 %v152_v39, %v154_v40  ;;  %v186_v55 = vsub.s32 2, %v154_v40 }
  0x3f   :  { %v136_v31 = vadd.f32 1e-05, %v132_v27  ;;  %v138_v32 = vadd.f32 1e-05, %v134_v28  ;;  %v190_v56 = vsub.s32 3, %v154_v40 }
  0x40   :  { %v129_v33 = vsub.f32 %v121_v29, %v125_v25  ;;  %431 = vrsqrt.f32 %v135_v30 }
  0x41   :  { %433 = vrsqrt.f32 %v136_v31 }
  0x42   :  { %v133_v34 = vmax.f32 %v129_v33, 0.0  ;;  %435 = vrsqrt.f32 %v138_v32 }
  0x44   :  { %v137_v35 = vadd.f32 1e-05, %v133_v34 }
  0x46   :  { %437 = vrsqrt.f32 %v137_v35 }
  0x4a   :  { %v432_v41 = vpop.eup %431 }
  0x4b   :  { %v434_v42 = vpop.eup %433 }
  0x4c   :  { %v148_v43 = vcombine.low %v432_v41, %v434_v42  ;;  %v436_v45 = vpop.eup %435 }
  0x4e   :  { %v156_v48 = vrot.slane %v148_v43, %v155_v44 }
  0x50   :  { %v438_v46 = vpop.eup %437 }
  0x51   :  { %v149_v47 = vcombine.low %v438_v46, %v436_v45 }
  0x53   :  { %v163_v49 = vrot.slane %v149_v47, %v155_v44 }
  0x55   :  { %v164_v50 = vcombine.low %v156_v48, %v163_v49 }
  0x57   :  { %v171_v53 = vrot.slane %v164_v50, %v155_v44 }
  0x59   :  { %v173_v57 = vmul.f32 %v171_v53, %v143_v51 }
  0x5b   :  { %v179_v59 = vrot.slane %v173_v57, %v178_v52  ;;  %v183_v60 = vrot.slane %v173_v57, %v182_v54  ;;  %v187_v61 = vrot.slane %v173_v57, %v186_v55  ;;  %v191_v62 = vrot.slane %v173_v57, %v190_v56 }
  0x5d   :  { %v196_v2 = vmul.f32 %v179_v59, %v541_v7  ;;  %v197_v3 = vmul.f32 %v183_v60, %v116_v10  ;;  %v198_v4 = vmul.f32 %v187_v61, %v117_v17  ;;  %v199_v5 = vmul.f32 %v191_v62, %v543_v8  ;;  %v174_v7 = vld [vmem:[%s562_s2] sm:$0xf] }
  0x5e   :  { %v235_v6 = vmul.f32 %v231_v58, %v183_v60  ;;  %v234_v9 = vmul.f32 %v230_v63, %v179_v59  ;;  %v237_v11 = vmul.f32 %v233_v0, %v191_v62  ;;  %v236_v12 = vmul.f32 %v232_v1, %v187_v61 }
  0x5f   :  { %v204_v13 = vcombine.low %v196_v2, %v197_v3  ;;  %v205_v14 = vcombine.low %v198_v4, %v199_v5 }
  0x60   :  { %332 = vmatprep.mubr.f32.mxu1 %v235_v6  ;;  %402 = vmatprep.mubr.f32.mxu0 %v237_v11 }
  0x61   :  { %v212_v15 = vrot.slane %v204_v13, %v155_v44  ;;  %v219_v16 = vrot.slane %v205_v14, %v155_v44  ;;  %333 = vmatmul.mubr.f32.vlgmr.msra.gmra.mrb[0].mxu1 %v234_v9  ;;  %403 = vmatmul.mubr.f32.vlgmr.msra.gmra.mrb[0].mxu0 %v236_v12 }
  0x63   :  { %v220_v18 = vcombine.low %v212_v15, %v219_v16 }
  0x65   :  { %v227_v10 = vrot.slane %v220_v18, %v155_v44 }
  0x67   :  { %v229_v17 = vsub.f32 %v174_v7, %v227_v10 }
  0x69   :  { %v246_v8 = vrot.slane %v229_v17, %v182_v54  ;;  %v242_v19 = vrot.slane %v229_v17, %v178_v52  ;;  %v250_v20 = vrot.slane %v229_v17, %v186_v55  ;;  %v254_v21 = vrot.slane %v229_v17, %v190_v56 }
  0x6b   :  { %v260_v22 = vmul.f32 %v246_v8, %v231_v58  ;;  %v259_v23 = vmul.f32 %v242_v19, %v230_v63  ;;  %v261_v24 = vmul.f32 %v250_v20, %v232_v1  ;;  %v262_v25 = vmul.f32 %v254_v21, %v233_v0 }
  0x6d   :  { %v263_v26 = vadd.f32 %v260_v22, %v259_v23 }
  0x6f   :  { %v264_v27 = vadd.f32 %v263_v26, %v261_v24 }
  0x71   :  { %v265_v28 = vadd.f32 %v264_v27, %v262_v25 }
  0x73   :  { %266 = vadd.xlane.f32.xlu0 %v265_v28 }
 0x100   :  { %v267_v29 = vpop.xlane.xlu0 %266 }
 0x134   :  { %v334_v30 = vpop.f32.mrb[0].mxu1  ;;  %v404_v31 = vpop.f32.mrb[0].mxu0 }
 0x135   :  { %v335_v32 = vadd.f32 %v334_v30, %v267_v29  ;;  %v336_v33 = vpop.f32.mrb[1].mxu1  ;;  %v406_v34 = vpop.f32.mrb[1].mxu0 }
 0x137   :  { %v405_v35 = vadd.f32 %v404_v31, %v335_v32 }
 0x139   :  { %409 = vst.msk [vmem:[%s564_s4] sm:$0xff] %vm408_vm0, %v405_v35 }
 0x13a   :  { %414 = vsyncpa [#allocation3], 1 }
 0x13b   :  { %415 = vsyncpa [#allocation5], 1 }

</bundles_post_ra>
